<compile_context>
chip_gen: v6e
topology: v6e:2x2x1
jax: 0.10.0
libtpu: 0.0.40
codegen_flags: <defaults>
</compile_context>

<pallas_src>
import jax
import jax.numpy as jnp
from jax.experimental import pallas as pl
from jax.experimental.pallas import tpu as pltpu


def _conv1x1_kernel(x_ref, w_ref, o_ref):
    # x_ref: (1, C_in,  TILE_S)   one batch element, one spatial tile
    # w_ref: (C_out, C_in)        full (tiny) weight matrix
    # o_ref: (1, C_out, TILE_S)
    x = x_ref[0]          # (C_in, TILE_S)
    w = w_ref[...]        # (C_out, C_in)
    c_out, c_in = w.shape
    tile_s = x.shape[1]

    if c_in <= 16:
        # VPU path: unrolled broadcast-FMA over the (few) input channels.
        # Each term: (C_out, 1) weight column  *  (1, TILE_S) channel row.
        acc = jnp.zeros((c_out, tile_s), dtype=jnp.float32)
        for ci in range(c_in):
            acc = acc + (
                w[:, ci : ci + 1].astype(jnp.float32)
                * x[ci : ci + 1, :].astype(jnp.float32)
            )
    else:
        # MXU path for wider channel counts.
        acc = jnp.dot(w, x, preferred_element_type=jnp.float32)

    o_ref[0] = acc.astype(o_ref.dtype)


def _pick_tile_s(S, C, itemsize):
    """Largest lane-dense spatial tile keeping per-buffer size ~2 MiB."""
    budget_bytes = 2 * 1024 * 1024
    max_tile = max(128, (budget_bytes // max(1, C * itemsize)) // 128 * 128)
    if S <= max_tile:
        return S          # full extent is always a legal block shape
    return max_tile       # multiple of 128; last grid block is masked by Pallas


def identity_conv_layer(x, weight):
    """1x1 conv, no bias: equivalent to nn.Conv2d(C, C, kernel_size=1, bias=False).

    Args:
      x:      (N, C, H, W) input (NCHW, PyTorch convention).
      weight: (C_out, C_in, 1, 1) conv weight.

    Returns:
      (N, C_out, H, W) output, NCHW.
    """
    N, C, H, W = x.shape
    C_out, C_in, kh, kw = weight.shape
    assert kh == 1 and kw == 1, "IdentityConvLayer uses a 1x1 kernel"
    assert C_in == C, "input channel mismatch"

    S = H * W
    x3 = x.reshape(N, C, S)                 # free reshape (trailing dims merge)
    w2 = weight.reshape(C_out, C_in)

    itemsize = jnp.dtype(x.dtype).itemsize
    tile_s = _pick_tile_s(S, max(C_in, C_out), itemsize)
    grid = (N, pl.cdiv(S, tile_s))

    cost = pl.CostEstimate(
        flops=2 * N * S * C_out * C_in,
        transcendentals=0,
        bytes_accessed=(N * C_in * S + N * C_out * S) * itemsize
        + C_out * C_in * jnp.dtype(weight.dtype).itemsize,
    )

    y3 = pl.pallas_call(
        _conv1x1_kernel,
        out_shape=jax.ShapeDtypeStruct((N, C_out, S), x.dtype),
        grid=grid,
        in_specs=[
            pl.BlockSpec((1, C_in, tile_s), lambda n, s: (n, 0, s)),
            pl.BlockSpec((C_out, C_in), lambda n, s: (0, 0)),
        ],
        out_specs=pl.BlockSpec((1, C_out, tile_s), lambda n, s: (n, 0, s)),
        compiler_params=pltpu.CompilerParams(
            dimension_semantics=("parallel", "parallel"),
        ),
        cost_estimate=cost,
    )(x3, w2)

    return y3.reshape(N, C_out, H, W)


if __name__ == "__main__":
    key = jax.random.PRNGKey(0)
    k_x, k_w = jax.random.split(key)

    N, C, H, W = 2, 4, 16, 16
    x = jax.random.normal(k_x, (N, C, H, W), dtype=jnp.float32)

    # 1) Module's deterministic init: identity 1x1 conv weight, no bias.
    w_eye = jnp.eye(C, dtype=jnp.float32).reshape(C, C, 1, 1)
    y = identity_conv_layer(x, w_eye)
    y = jax.block_until_ready(y)
    assert y.shape == x.shape
    assert y.dtype == x.dtype
    assert jnp.allclose(y, x, atol=1e-5, rtol=1e-5)

    # 2) General-weight check (the conv is trainable) vs a plain-JAX reference.
    w_rand = jax.random.normal(k_w, (C, C, 1, 1), dtype=jnp.float32)
    y2 = jax.block_until_ready(identity_conv_layer(x, w_rand))
    ref = jnp.einsum("oc,nchw->nohw", w_rand.reshape(C, C), x)
    assert jnp.allclose(y2, ref, atol=1e-5, rtol=1e-5)

    print("KERNEL_OK")
</pallas_src>

<mosaic_0001>
module attributes {stable_mosaic.version = 11 : i64} {
  func.func @_conv1x1_kernel(%arg0: i32, %arg1: i32, %arg2: memref<1x4x256xf32, #tpu.memory_space<vmem>>, %arg3: memref<4x4xf32, #tpu.memory_space<vmem>>, %arg4: memref<1x4x256xf32, #tpu.memory_space<vmem>>) attributes {dimension_semantics = [#tpu.dimension_semantics<parallel>, #tpu.dimension_semantics<parallel>], iteration_bounds = array<i64: 2, 1>, scalar_prefetch = 0 : i64, scratch_operands = 0 : i64, tpu.core_type = #tpu.core_type<tc>, window_params = [{transform_indices = @transform_0, window_bounds = array<i64: 1, 4, 256>}, {pipeline_mode = #tpu.pipeline_mode<synchronous>, transform_indices = @transform_1, window_bounds = array<i64: 4, 4>}, {transform_indices = @transform_2, window_bounds = array<i64: 1, 4, 256>}]} {
    %c0 = arith.constant 0 : index
    %c0_0 = arith.constant 0 : index
    %c0_1 = arith.constant 0 : index
    %0 = vector.load %arg2[%c0, %c0_0, %c0_1] : memref<1x4x256xf32, #tpu.memory_space<vmem>>, vector<1x4x256xf32>
    %1 = vector.shape_cast %0 : vector<1x4x256xf32> to vector<4x256xf32>
    %c0_2 = arith.constant 0 : index
    %c0_3 = arith.constant 0 : index
    %2 = vector.load %arg3[%c0_2, %c0_3] : memref<4x4xf32, #tpu.memory_space<vmem>>, vector<4x4xf32>
    %cst = arith.constant 0.000000e+00 : f32
    %3 = vector.broadcast %cst : f32 to vector<4x256xf32>
    %4 = vector.extract_strided_slice %2 {offsets = [0, 0], sizes = [4, 1], strides = [1, 1]} : vector<4x4xf32> to vector<4x1xf32>
    %5 = vector.extract_strided_slice %1 {offsets = [0, 0], sizes = [1, 256], strides = [1, 1]} : vector<4x256xf32> to vector<1x256xf32>
    %6 = vector.broadcast %4 : vector<4x1xf32> to vector<4x256xf32>
    %7 = vector.broadcast %5 : vector<1x256xf32> to vector<4x256xf32>
    %8 = arith.mulf %6, %7 : vector<4x256xf32>
    %9 = arith.addf %3, %8 : vector<4x256xf32>
    %10 = vector.extract_strided_slice %2 {offsets = [0, 1], sizes = [4, 1], strides = [1, 1]} : vector<4x4xf32> to vector<4x1xf32>
    %11 = vector.extract_strided_slice %1 {offsets = [1, 0], sizes = [1, 256], strides = [1, 1]} : vector<4x256xf32> to vector<1x256xf32>
    %12 = vector.broadcast %10 : vector<4x1xf32> to vector<4x256xf32>
    %13 = vector.broadcast %11 : vector<1x256xf32> to vector<4x256xf32>
    %14 = arith.mulf %12, %13 : vector<4x256xf32>
    %15 = arith.addf %9, %14 : vector<4x256xf32>
    %16 = vector.extract_strided_slice %2 {offsets = [0, 2], sizes = [4, 1], strides = [1, 1]} : vector<4x4xf32> to vector<4x1xf32>
    %17 = vector.extract_strided_slice %1 {offsets = [2, 0], sizes = [1, 256], strides = [1, 1]} : vector<4x256xf32> to vector<1x256xf32>
    %18 = vector.broadcast %16 : vector<4x1xf32> to vector<4x256xf32>
    %19 = vector.broadcast %17 : vector<1x256xf32> to vector<4x256xf32>
    %20 = arith.mulf %18, %19 : vector<4x256xf32>
    %21 = arith.addf %15, %20 : vector<4x256xf32>
    %22 = vector.extract_strided_slice %2 {offsets = [0, 3], sizes = [4, 1], strides = [1, 1]} : vector<4x4xf32> to vector<4x1xf32>
    %23 = vector.extract_strided_slice %1 {offsets = [3, 0], sizes = [1, 256], strides = [1, 1]} : vector<4x256xf32> to vector<1x256xf32>
    %24 = vector.broadcast %22 : vector<4x1xf32> to vector<4x256xf32>
    %25 = vector.broadcast %23 : vector<1x256xf32> to vector<4x256xf32>
    %26 = arith.mulf %24, %25 : vector<4x256xf32>
    %27 = arith.addf %21, %26 : vector<4x256xf32>
    %c0_4 = arith.constant 0 : index
    %c0_5 = arith.constant 0 : index
    %c0_6 = arith.constant 0 : index
    %28 = vector.load %arg4[%c0_4, %c0_5, %c0_6] : memref<1x4x256xf32, #tpu.memory_space<vmem>>, vector<1x4x256xf32>
    %29 = vector.shape_cast %28 : vector<1x4x256xf32> to vector<4x256xf32>
    %30 = vector.shape_cast %27 : vector<4x256xf32> to vector<1x4x256xf32>
    tpu.vector_store %arg4[%c0_4, %c0_5, %c0_6], %30 {strides = array<i32>} : memref<1x4x256xf32, #tpu.memory_space<vmem>>, vector<1x4x256xf32>,
    return
  }
  func.func @transform_0(%arg0: i32, %arg1: i32) -> (i32, i32, i32) {
    %c0_i32 = arith.constant 0 : i32
    %c0_i32_0 = arith.constant 0 : i32
    return %arg0, %c0_i32, %arg1 : i32, i32, i32
  }
  func.func @transform_1(%arg0: i32, %arg1: i32) -> (i32, i32) {
    %c0_i32 = arith.constant 0 : i32
    %c0_i32_0 = arith.constant 0 : i32
    %c0_i32_1 = arith.constant 0 : i32
    return %c0_i32, %c0_i32_0 : i32, i32
  }
  func.func @transform_2(%arg0: i32, %arg1: i32) -> (i32, i32, i32) {
    %c0_i32 = arith.constant 0 : i32
    %c0_i32_0 = arith.constant 0 : i32
    return %arg0, %c0_i32, %arg1 : i32, i32, i32
  }
}

</mosaic_0001>

<bundles_post_ra>
// kernel: tpu_custom_call.1
= control target key start
LH: loop header
LB: loop body
LE: loop exit
PB: predicated region body
PF: predicated region fallthrough
CT: control target
= control target key end

     0   :  { %7 = vsyncpa [#allocation3], 0  ;;  %s845_s0 = inlined_call_operand.hbm [shape: f32[2,4,256], index: 0, kind: input, shape index: {}]   ;;  %s846_s1 = inlined_call_operand.hbm [shape: f32[4,4], index: 1, kind: input, shape index: {}]   ;;  %s847_s2 = inlined_call_operand.hbm [shape: f32[2,4,256], index: 2, kind: output, shape index: {}]  }
   0x1   :  { %9 = vsyncpa [#allocation3 + $0x1], 0 }
   0x2   :  { %10 = vsyncpa [#allocation6], 0 }
   0x3   :  { %11 = vsyncpa [#allocation4], 0 }
   0x4   :  { %13 = vsyncpa [#allocation4 + $0x1], 0  ;;  %s680_s9 = smov 0   ;;  %s682_s10 = smov 0  }
   0x5   :  { %s684_s11 = smov 0   ;;  %s686_s12 = smov 0  }
   0x6   :  { %s688_s13 = smov 0   ;;  %s690_s14 = smov 0  }
   0x7 LB: > { %s417_s15 = sadd.s32 4294967295, %s656_s14   ;;  %s418_s16 = sadd.s32 4294967294, %s656_s14   ;;  %s656_s14 = sphi %s690_s14, %s19_s14   ;;  %s652_s13 = sphi %s688_s13, %s864_s13   ;;  %s648_s12 = sphi %s686_s12, %s863_s12   ;;  %s644_s11 = sphi %s684_s11, %s862_s11   ;;  %s640_s10 = sphi %s682_s10, %s861_s10   ;;  %s636_s9 = sphi %s680_s9, %s860_s9  }
   0x8   : > { %p53_p0 = scmp.ne.s32.totalorder %s640_s10, %s636_s9  ;;  %p714_p1 = scmp.eq.s32.totalorder %s417_s15, 0 }
   0x9   : > { %p718_p2 = scmp.eq.s32.totalorder %s417_s15, 1  ;;  %p106_p3 = scmp.eq.s32.totalorder %s418_s16, 1 }
   0xa   : > { %p724_p4 = por %p714_p1, %p53_p0  ;;  %p419_p5 = scmp.ge.s32.totalorder %s656_s14, 1 }
   0xb   : > { %p729_p6 = por %p106_p3, %p53_p0  ;;  %p113_p7 = scmp.lt.s32.totalorder %s656_s14, 3 }
   0xc   : > { %s851_s19 = scalar_select %p724_p4, 1, 0 }
   0xd   : > { %s852_s20 = scalar_select %p729_p6, 1, 0 }
   0xe   : > { %p734_p8 = pnand %p419_p5, %p113_p7  ;;  %s658_s22 = smov [#allocation5]  }
   0xf   : > { %s126_s23 = sshll.u32 %s658_s22, 4  ;;  %s31_s25 = sadd.s32 1, %s652_s13  ;;  %s127_s23 = int_to_ptr.vmem [resolvable:$true] %s126_s23 }
  0x10   : > { %p444_p10 = pneg %p734_p8  ;;  %s40_s26 = sadd.s32 1, %s644_s11 }
  0x11   : > { %p33_p12 = scmp.ge.s32.totalorder %s31_s25, 2  ;;  %s529_s27 = scalar_lea.vmem %s127_s23, 64 }
  0x12   : > { %p743_p11 = pnand %p444_p10, %p714_p1  ;;  %p530_p0 = scmp.ne.s32.totalorder %s127_s23, %s529_s27 }
  0x13   : > { %p537_p7 = scmp.lt.s32.totalorder %s127_s23, %s127_s23  ;;  %p538_p6 = scmp.lt.s32.totalorder %s529_s27, %s529_s27 }
  0x14   : > { %p520_p13 = pneg %p743_p11 }
  0x15   : > { %p539_p9 = por %p538_p6, %p537_p7 }
  0x16   : > { %p532_p3 = pnand %p530_p0, %p520_p13 }
  0x18   : > { %p533_p5 = pneg %p532_p3 }
  0x1a   : > { %p540_p4 = pnand %p539_p9, %p533_p5 }
  0x1c   : > { %543 = shalt.err (!%p540_p4)
}
  0x1d   : > { %447 = dma.hbm_to_vmem [thread:$0]  (!%p743_p11), %s846_s1, 64, %s127_s23, [#allocation6]  }
  0x1e   : > { %s866_s25 = smov (%p33_p12, %s31_s25), 0  ;;  %p47_p6 = scmp.ne.s32.totalorder %s644_s11, %s640_s10 }
  0x1f   : > { %p48_p4 = scmp.eq.s32.totalorder %s656_s14, 0  ;;  %s35_s30 = ssub.s32 %s652_s13, %s866_s25 }
  0x20   : > { %p457_p9 = scmp.lt.s32.totalorder %s656_s14, 2  ;;  %p38_p10 = scmp.eq.s32.totalorder %s35_s30, 0 }
  0x21   : > { %p49_p13 = por %p48_p4, %p47_p6  ;;  %p766_p0 = por %p718_p2, %p47_p6 }
  0x22   : > { %s137_s4 = sand.u32 1, %s644_s11   ;;  %s434_s7 = sshll.u32 %s652_s13, 7 }
  0x23   : > { %s772_s5 = scalar_select %p38_p10, %s644_s11, %s40_s26  }
  0x24   : > { %s422_s6 = sshll.u32 %s137_s4, 3  ;;  %s149_s16 = scalar_lea.hbm %s845_s0, %s434_s7 }
  0x25   : > { %s141_s22 = scalar_lea.vmem [#allocation2], %s422_s6  ;;  %p778_p11 = pnand %p457_p9, %p49_p13 }
  0x26   : > { %s151_s23 = sshll.u32 %s141_s22, 4  ;;  %s138_s18 = scalar_lea.sflag [#allocation3], %s137_s4  ;;  %s152_s23 = int_to_ptr.vmem [resolvable:$true] %s151_s23 }
  0x27   : > { %p546_p2 = pneg %p778_p11  ;;  %s557_s27 = scalar_lea.vmem %s152_s23, 128 }
  0x28   : > { %p558_p12 = scmp.ne.s32.totalorder %s152_s23, %s557_s27  ;;  %s659_s26 = smov [#allocation2]  }
  0x29   : > { %s562_s28 = sshll.u32 %s659_s26, 4  ;;  %s563_s28 = int_to_ptr.vmem [resolvable:$false] %s562_s28 }
  0x2a   : > { %p560_p3 = pnand %p558_p12, %p546_p2  ;;  %s564_s29 = scalar_lea.vmem %s563_s28, 256 }
  0x2b   : > { %p565_p7 = scmp.lt.s32.totalorder %s152_s23, %s563_s28  ;;  %p566_p6 = scmp.lt.s32.totalorder %s564_s29, %s557_s27 }
  0x2c   : > { %p561_p5 = pneg %p560_p3 }
  0x2d   : > { %p567_p4 = por %p566_p6, %p565_p7 }
  0x2f   : > { %p568_p10 = pnand %p567_p4, %p561_p5 }
  0x31   : > { %571 = shalt.err (!%p568_p10)
}
  0x32   : > { %451 = dma.hbm_to_vmem [thread:$0]  (!%p778_p11), %s149_s16, 128, %s152_s23, %s138_s18  }
  0x33   : > { %160 = sbr.rel (%p734_p8) target bundleno = 213 (0xd5), region = 28  ;;  %s789_s30 = sand.u32 (!%p734_p8), 1, %s640_s10  }
  0x34   : > { %s426_s4 = sshll.u32 (!%p734_p8), %s789_s30, 3  ;;  %s163_s6 = scalar_lea.sflag (!%p734_p8), [#allocation3], %s789_s30 }
  0x35   : > { %s166_s7 = scalar_lea.vmem (!%p734_p8), [#allocation2], %s426_s4  ;;  %p857_p9 = scmp.ne.s32.totalorder (!%p734_p8), %s851_s19, 0 }
  0x38   : > { %623 = dma.done.wait (%p857_p9), %s163_s6, 128  }
  0x39   : > { %625 = vsyncadd (%p857_p9), %s163_s6, 4294967168 }
  0x3a   : > { %627 = dma.done.wait (%p714_p1), [#allocation6], 64  }
  0x3b   : > { %629 = vsyncadd (%p714_p1), [#allocation6], 4294967232  ;;  %v660_v0 = vmov 0   ;;  %v661_v1 = vmov 2   ;;  %v194_v2 = vld [vmem:[#allocation5] sm:$0xf]  ;;  %v201_v5 = vlaneseq }
  0x3c   : > { %513 = vset.pattern.permute.xlu0 %v660_v0  ;;  %515 = vset.pattern.permute.xlu1 %v661_v1  ;;  %v662_v3 = vmov 1   ;;  %v663_v4 = vmov 3   ;;  %v193_v11 = vld [vmem:[%s166_s7] sm:$0xff]  ;;  %s435_s17 = sshll.u32 %s648_s12, 7  ;;  %s190_s19 = scalar_lea.vmem [#allocation7], %s426_s4 }
  0x3d   : > { %197 = vperm.xlu0 %513, %v194_v2   ;;  %250 = vperm.xlu1 %515, %v194_v2   ;;  %v202_v6 = vshrl.u32 %v201_v5, 7  ;;  %s323_s21 = sshll.u32 %s190_s19, 4  ;;  %s321_s16 = scalar_lea.hbm %s847_s2, %s435_s17  ;;  %s324_s21 = int_to_ptr.vmem [resolvable:$true] %s323_s21 }
  0x3e   : > { %s307_s22 = scalar_lea.sflag [#allocation4], %s789_s30  ;;  %s572_s23 = scalar_lea.vmem %s324_s21, 128 }
  0x3f   : > { %v203_v7 = vsub.s32 0, %v202_v6  ;;  %v207_v8 = vsub.s32 4, %v202_v6  ;;  %v229_v9 = vsub.s32 1, %v202_v6  ;;  %v233_v10 = vsub.s32 5, %v202_v6  ;;  %p573_p1 = scmp.ne.s32.totalorder %s324_s21, %s572_s23  ;;  %s664_s24 = smov [#allocation7]  }
  0x40   : > { %v255_v12 = vsub.s32 2, %v202_v6  ;;  %v259_v13 = vsub.s32 6, %v202_v6  ;;  %v281_v14 = vsub.s32 3, %v202_v6  ;;  %v285_v15 = vsub.s32 7, %v202_v6  ;;  %s576_s12 = sshll.u32 %s664_s24, 4  ;;  %s577_s12 = int_to_ptr.vmem [resolvable:$false] %s576_s12 }
  0x41   : > { %514 = vset.pattern.permute.xlu0 %v662_v3  ;;  %516 = vset.pattern.permute.xlu1 %v663_v4  ;;  %v204_v16 = vrot.slane %v193_v11, %v203_v7  ;;  %v208_v17 = vrot.slane %v193_v11, %v207_v8  ;;  %v230_v18 = vrot.slane %v193_v11, %v229_v9  ;;  %p574_p8 = pnand %p573_p1, %p766_p0  ;;  %s578_s18 = scalar_lea.vmem %s577_s12, 256 }
  0x42   : > { %224 = vperm.xlu0 %514, %v194_v2   ;;  %276 = vperm.xlu1 %516, %v194_v2   ;;  %v234_v19 = vrot.slane %v193_v11, %v233_v10  ;;  %v256_v20 = vrot.slane %v193_v11, %v255_v12  ;;  %v260_v21 = vrot.slane %v193_v11, %v259_v13  ;;  %p579_p11 = scmp.lt.s32.totalorder %s324_s21, %s577_s12  ;;  %p580_p2 = scmp.lt.s32.totalorder %s578_s18, %s572_s23 }
  0x43   : > { %v282_v24 = vrot.slane %v193_v11, %v281_v14  ;;  %v286_v25 = vrot.slane %v193_v11, %v285_v15  ;;  %v214_v26 = vrot.slane %v204_v16, %v203_v7  ;;  %v218_v27 = vrot.slane %v208_v17, %v203_v7  ;;  %p575_p13 = pneg %p574_p8 }
  0x44   : > { %v240_v28 = vrot.slane %v230_v18, %v229_v9  ;;  %v244_v29 = vrot.slane %v234_v19, %v229_v9  ;;  %v266_v30 = vrot.slane %v256_v20, %v255_v12  ;;  %v270_v31 = vrot.slane %v260_v21, %v255_v12  ;;  %p581_p12 = por %p580_p2, %p579_p11 }
  0x45   : > { %v292_v32 = vrot.slane %v282_v24, %v281_v14  ;;  %v296_v33 = vrot.slane %v286_v25, %v281_v14 }
  0x46   : > { %517 = vset.pattern.permute.xlu0 %v663_v4  ;;  %p582_p3 = pnand %p581_p12, %p575_p13 }
  0xb8   : > { %v198_v22 = vpop.permute.xlu0 %197  ;;  %v251_v23 = vpop.permute.xlu1 %250 }
  0xb9   : > { %v219_v36 = vmul.f32 %v214_v26, %v198_v22  ;;  %v220_v37 = vmul.f32 %v218_v27, %v198_v22  ;;  %v271_v40 = vmul.f32 %v266_v30, %v251_v23  ;;  %v272_v41 = vmul.f32 %v270_v31, %v251_v23 }
  0xbd   : > { %v225_v34 = vpop.permute.xlu0 %224  ;;  %v277_v35 = vpop.permute.xlu1 %276 }
  0xbe   : > { %v245_v38 = vmul.f32 %v240_v28, %v225_v34  ;;  %v246_v39 = vmul.f32 %v244_v29, %v225_v34  ;;  %v297_v44 = vmul.f32 %v292_v32, %v277_v35  ;;  %v298_v45 = vmul.f32 %v296_v33, %v277_v35 }
  0xc0   : > { %v247_v42 = vadd.f32 %v245_v38, %v219_v36  ;;  %v248_v43 = vadd.f32 %v246_v39, %v220_v37 }
  0xc2   : > { %v273_v46 = vadd.f32 %v271_v40, %v247_v42  ;;  %v274_v47 = vadd.f32 %v272_v41, %v248_v43 }
  0xc4   : > { %v299_v48 = vadd.f32 %v297_v44, %v273_v46  ;;  %v300_v49 = vadd.f32 %v298_v45, %v274_v47 }
  0xc6   : > { %v303_v50 = vcombine.low %v299_v48, %v300_v49 }
  0xc8   : > { %305 = vst [vmem:[%s190_s19] sm:$0xff] %v303_v50 }
  0xc9   : > { %585 = shalt.err (!%p582_p3)
}
  0xca   : > { %s586_s27 = scalar_lea.hbm %s321_s16, 128  ;;  %s590_s29 = scalar_lea.hbm %s847_s2, 256 }
  0xcb   : > { %p587_p5 = scmp.ne.s32.totalorder %s321_s16, %s586_s27  ;;  %p591_p4 = scmp.lt.s32.totalorder %s321_s16, %s847_s2 }
  0xcc   : > { %p592_p10 = scmp.lt.s32.totalorder %s590_s29, %s586_s27 }
  0xcd   : > { %p588_p7 = pnand %p587_p5, %p766_p0 }
  0xce   : > { %p593_p9 = por %p592_p10, %p591_p4 }
  0xcf   : > { %p589_p6 = pneg %p588_p7 }
  0xd1   : > { %p594_p1 = pnand %p593_p9, %p589_p6 }
  0xd3   : > { %597 = shalt.err (!%p594_p1)
}
  0xd4   : > { %442 = dma.vmem_to_hbm [thread:$0]  (%p766_p0), %s324_s21, 128, %s321_s16, %s307_s22  }
  0xd5 PF: > { %s335_s6 = sand.u32 1, %s636_s9   ;;  %p858_p8 = scmp.ne.s32.totalorder %s852_s20, 0 }
  0xd6   : > { %p859_p13 = scmp.ge.s32.totalorder %s656_s14, 2  ;;  %s336_s7 = scalar_lea.sflag [#allocation4], %s335_s6 }
  0xd8   : > { %p453_p11 = pnand %p859_p13, %p858_p8 }
  0xda   : > { %p454_p2 = pneg %p453_p11 }
  0xdc   : > { %631 = dma.done.wait (%p454_p2), %s336_s7, 128  }
  0xdd   : > { %633 = vsyncadd (%p454_p2), %s336_s7, 4294967168  ;;  %s19_s14 = sadd.s32 1, %s656_s14   ;;  %s860_s9 = smov %s640_s10 }
  0xde   : > { %p16_p12 = scmp.ge.s32.totalorder %s19_s14, 4   ;;  %s861_s10 = smov %s644_s11 }
  0xdf   : > { %s862_s11 = smov %s772_s5  ;;  %s863_s12 = smov %s652_s13 }
  0xe0   : > { %s864_s13 = smov %s866_s25  ;;  %18 = sbr.rel (!%p16_p12) target bundleno = 7 (0x7), region = 77 }
  0xe5   :  { %341 = vsyncpa [#allocation3], 1 }
  0xe6   :  { %343 = vsyncpa [#allocation3 + $0x1], 1 }
  0xe7   :  { %344 = vsyncpa [#allocation6], 1 }
  0xe8   :  { %345 = vsyncpa [#allocation4], 1 }
  0xe9   :  { %347 = vsyncpa [#allocation4 + $0x1], 1 }

</bundles_post_ra>
